<compile_context>
chip_gen: v5e
topology: v5e:2x2
jax: 0.10.0
libtpu: 0.0.40
codegen_flags: <defaults>
</compile_context>

<pallas_src>
import functools
import math

import numpy as np
import jax
import jax.numpy as jnp
from jax.experimental import pallas as pl
from jax.experimental.pallas import tpu as pltpu


# ----------------------------------------------------------------------------
# Static 1-D interpolation matrices (PyTorch Upsample, align_corners=False)
# ----------------------------------------------------------------------------
def _interp_matrix(in_size, out_size, scale):
    A = np.zeros((out_size, in_size), np.float32)
    for o in range(out_size):
        src = (o + 0.5) / float(scale) - 0.5
        src = max(src, 0.0)                      # PyTorch clamps negatives to 0
        i0 = min(int(math.floor(src)), in_size - 1)
        i1 = min(i0 + 1, in_size - 1)
        w1 = src - float(i0)
        A[o, i0] += 1.0 - w1
        A[o, i1] += w1
    return A


# ----------------------------------------------------------------------------
# Pallas kernel: fused 1x1x1 conv + separable trilinear upsample
# ----------------------------------------------------------------------------
def _dsv_kernel(w_ref, b_ref, x_ref, ahw_ref, ad_ref, o_ref, *, c_in, c_out):
    # w_ref  : (C_out, C_in)  f32  SMEM
    # b_ref  : (C_out,)       f32  SMEM
    # x_ref  : (1, C_in, D, H*W)      VMEM block for batch element n
    # ahw_ref: (H*W, Ho*Wo)           VMEM   kron(Ah, Aw).T
    # ad_ref : (Do, D)                VMEM
    # o_ref  : (1, C_out, Do, Ho*Wo)  VMEM block for batch element n
    ahw = ahw_ref[...]
    ad = ad_ref[...]

    for co in range(c_out):
        # --- 1x1x1 conv for this output channel (VPU scalar*vector FMAs) ----
        y = x_ref[0, 0] * w_ref[co, 0]
        for ci in range(1, c_in):
            y = y + x_ref[0, ci] * w_ref[co, ci]
        y = y + b_ref[co]                                          # (D, H*W)

        # --- H & W interpolation fused: one flat lane-dense MXU matmul ------
        t = jnp.dot(y, ahw, preferred_element_type=jnp.float32)    # (D, Ho*Wo)

        # --- D interpolation: second small MXU matmul ------------------------
        out = jnp.dot(ad, t, preferred_element_type=jnp.float32)   # (Do, Ho*Wo)

        # --- single full-tile, lane-dense store per output channel ----------
        o_ref[0, co] = out


def unet_dsv3_forward(x, weight, bias, scale_factor):
    """x: (N, C_in, D, H, W) f32; weight: (C_out, C_in); bias: (C_out,).
    Same semantics as nn.Conv3d(kernel_size=1) followed by
    nn.Upsample(scale_factor, mode='trilinear', align_corners=False)."""
    N, C_in, D, H, W = x.shape
    C_out = weight.shape[0]
    s = int(scale_factor)
    Do, Ho, Wo = D * s, H * s, W * s

    Ah = _interp_matrix(H, Ho, s)                       # (Ho, H)
    Aw = _interp_matrix(W, Wo, s)                       # (Wo, W)
    AhwT = jnp.asarray(np.kron(Ah, Aw).T)               # (H*W, Ho*Wo)
    Ad = jnp.asarray(_interp_matrix(D, Do, s))          # (Do, D)

    x_flat = x.reshape(N, C_in, D, H * W)               # free contiguous view

    kernel = functools.partial(_dsv_kernel, c_in=C_in, c_out=C_out)

    out = pl.pallas_call(
        kernel,
        out_shape=jax.ShapeDtypeStruct((N, C_out, Do, Ho * Wo), jnp.float32),
        grid=(N,),
        in_specs=[
            # Tiny conv params live in SMEM (cheap scalar-indexed reads).
            pl.BlockSpec(memory_space=pltpu.MemorySpace.SMEM),       # weight
            pl.BlockSpec(memory_space=pltpu.MemorySpace.SMEM),       # bias
            # Activation block for one batch element, lane-denser (H*W) rows.
            pl.BlockSpec((1, C_in, D, H * W), lambda n: (n, 0, 0, 0)),
            # Grid-invariant interpolation matrices (KB-sized).
            pl.BlockSpec((H * W, Ho * Wo), lambda n: (0, 0)),
            pl.BlockSpec((Do, D), lambda n: (0, 0)),
        ],
        out_specs=pl.BlockSpec((1, C_out, Do, Ho * Wo),
                               lambda n: (n, 0, 0, 0)),
        compiler_params=pltpu.CompilerParams(
            dimension_semantics=("parallel",)),
    )(weight.astype(jnp.float32), bias.astype(jnp.float32), x_flat, AhwT, Ad)

    return out.reshape(N, C_out, Do, Ho, Wo)


# ----------------------------------------------------------------------------
# Pure-JAX reference (conv1x1x1 + separable trilinear upsample)
# ----------------------------------------------------------------------------
def _reference_forward(x, weight, bias, scale_factor):
    N, C_in, D, H, W = x.shape
    s = int(scale_factor)
    Do, Ho, Wo = D * s, H * s, W * s
    Ad = jnp.asarray(_interp_matrix(D, Do, s))
    Ah = jnp.asarray(_interp_matrix(H, Ho, s))
    Aw = jnp.asarray(_interp_matrix(W, Wo, s))
    y = jnp.einsum("ncdhw,oc->nodhw", x, weight) + bias[None, :, None, None, None]
    y = jnp.einsum("nodhw,Dd->noDhw", y, Ad)
    y = jnp.einsum("noDhw,Hh->noDHw", y, Ah)
    y = jnp.einsum("noDHw,Ww->noDHW", y, Aw)
    return y


if __name__ == "__main__":
    # Small, deterministic example consistent with UnetDsv3:
    # in_size=4, out_size=2, scale_factor=2, 5-D NCDHW input.
    N, C_IN, C_OUT = 2, 4, 2
    D = H = W = 8
    SCALE = 2

    key = jax.random.PRNGKey(0)
    kx, kw, kb = jax.random.split(key, 3)
    x = jax.random.normal(kx, (N, C_IN, D, H, W), dtype=jnp.float32)
    weight = 0.1 * jax.random.normal(kw, (C_OUT, C_IN), dtype=jnp.float32)
    bias = 0.1 * jax.random.normal(kb, (C_OUT,), dtype=jnp.float32)

    out = unet_dsv3_forward(x, weight, bias, SCALE)
    out = jax.block_until_ready(out)

    ref = _reference_forward(x, weight, bias, SCALE)
    assert out.shape == (N, C_OUT, D * SCALE, H * SCALE, W * SCALE)
    err = float(jnp.max(jnp.abs(out - ref)))
    assert err < 1e-4, f"max abs err {err}"

    print("KERNEL_OK")
</pallas_src>

<mosaic_0001>
module attributes {stable_mosaic.version = 11 : i64} {
  func.func @_dsv_kernel(%arg0: i32, %arg1: memref<2x4xf32, #tpu.memory_space<smem>>, %arg2: memref<2xf32, #tpu.memory_space<smem>>, %arg3: memref<1x4x8x64xf32, #tpu.memory_space<vmem>>, %arg4: memref<64x256xf32, #tpu.memory_space<vmem>>, %arg5: memref<16x8xf32, #tpu.memory_space<vmem>>, %arg6: memref<1x2x16x256xf32, #tpu.memory_space<vmem>>) attributes {dimension_semantics = [#tpu.dimension_semantics<parallel>], iteration_bounds = array<i64: 2>, scalar_prefetch = 0 : i64, scratch_operands = 0 : i64, tpu.core_type = #tpu.core_type<tc>, window_params = [{transform_indices = @transform_0, window_bounds = array<i64: 2, 4>}, {transform_indices = @transform_1, window_bounds = array<i64: 2>}, {transform_indices = @transform_2, window_bounds = array<i64: 1, 4, 8, 64>}, {pipeline_mode = #tpu.pipeline_mode<synchronous>, transform_indices = @transform_3, window_bounds = array<i64: 64, 256>}, {pipeline_mode = #tpu.pipeline_mode<synchronous>, transform_indices = @transform_4, window_bounds = array<i64: 16, 8>}, {transform_indices = @transform_5, window_bounds = array<i64: 1, 2, 16, 256>}]} {
    %c0 = arith.constant 0 : index
    %c0_0 = arith.constant 0 : index
    %0 = vector.load %arg4[%c0, %c0_0] : memref<64x256xf32, #tpu.memory_space<vmem>>, vector<64x256xf32>
    %c0_1 = arith.constant 0 : index
    %c0_2 = arith.constant 0 : index
    %1 = vector.load %arg5[%c0_1, %c0_2] : memref<16x8xf32, #tpu.memory_space<vmem>>, vector<16x8xf32>
    %c0_3 = arith.constant 0 : index
    %c0_4 = arith.constant 0 : index
    %c0_5 = arith.constant 0 : index
    %c0_6 = arith.constant 0 : index
    %2 = vector.load %arg3[%c0_3, %c0_4, %c0_5, %c0_6] : memref<1x4x8x64xf32, #tpu.memory_space<vmem>>, vector<1x1x8x64xf32>
    %3 = vector.shape_cast %2 : vector<1x1x8x64xf32> to vector<8x64xf32>
    %c0_7 = arith.constant 0 : index
    %c0_8 = arith.constant 0 : index
    %4 = memref.load %arg1[%c0_7, %c0_8] : memref<2x4xf32, #tpu.memory_space<smem>>
    %5 = vector.broadcast %4 : f32 to vector<8x64xf32>
    %6 = arith.mulf %3, %5 : vector<8x64xf32>
    %c0_9 = arith.constant 0 : index
    %c1 = arith.constant 1 : index
    %c0_10 = arith.constant 0 : index
    %c0_11 = arith.constant 0 : index
    %7 = vector.load %arg3[%c0_9, %c1, %c0_10, %c0_11] : memref<1x4x8x64xf32, #tpu.memory_space<vmem>>, vector<1x1x8x64xf32>
    %8 = vector.shape_cast %7 : vector<1x1x8x64xf32> to vector<8x64xf32>
    %c0_12 = arith.constant 0 : index
    %c1_13 = arith.constant 1 : index
    %9 = memref.load %arg1[%c0_12, %c1_13] : memref<2x4xf32, #tpu.memory_space<smem>>
    %10 = vector.broadcast %9 : f32 to vector<8x64xf32>
    %11 = arith.mulf %8, %10 : vector<8x64xf32>
    %12 = arith.addf %6, %11 : vector<8x64xf32>
    %c0_14 = arith.constant 0 : index
    %c2 = arith.constant 2 : index
    %c0_15 = arith.constant 0 : index
    %c0_16 = arith.constant 0 : index
    %13 = vector.load %arg3[%c0_14, %c2, %c0_15, %c0_16] : memref<1x4x8x64xf32, #tpu.memory_space<vmem>>, vector<1x1x8x64xf32>
    %14 = vector.shape_cast %13 : vector<1x1x8x64xf32> to vector<8x64xf32>
    %c0_17 = arith.constant 0 : index
    %c2_18 = arith.constant 2 : index
    %15 = memref.load %arg1[%c0_17, %c2_18] : memref<2x4xf32, #tpu.memory_space<smem>>
    %16 = vector.broadcast %15 : f32 to vector<8x64xf32>
    %17 = arith.mulf %14, %16 : vector<8x64xf32>
    %18 = arith.addf %12, %17 : vector<8x64xf32>
    %c0_19 = arith.constant 0 : index
    %c3 = arith.constant 3 : index
    %c0_20 = arith.constant 0 : index
    %c0_21 = arith.constant 0 : index
    %19 = vector.load %arg3[%c0_19, %c3, %c0_20, %c0_21] : memref<1x4x8x64xf32, #tpu.memory_space<vmem>>, vector<1x1x8x64xf32>
    %20 = vector.shape_cast %19 : vector<1x1x8x64xf32> to vector<8x64xf32>
    %c0_22 = arith.constant 0 : index
    %c3_23 = arith.constant 3 : index
    %21 = memref.load %arg1[%c0_22, %c3_23] : memref<2x4xf32, #tpu.memory_space<smem>>
    %22 = vector.broadcast %21 : f32 to vector<8x64xf32>
    %23 = arith.mulf %20, %22 : vector<8x64xf32>
    %24 = arith.addf %18, %23 : vector<8x64xf32>
    %c0_24 = arith.constant 0 : index
    %25 = memref.load %arg2[%c0_24] : memref<2xf32, #tpu.memory_space<smem>>
    %26 = vector.broadcast %25 : f32 to vector<8x64xf32>
    %27 = arith.addf %24, %26 : vector<8x64xf32>
    %cst = arith.constant dense<0.000000e+00> : vector<8x256xf32>
    %28 = tpu.matmul %27, %0, %cst {dimension_numbers = #tpu.dot_dimension_numbers<[1], [0], [0], [1], [0, 0, 1, 1], [], []>} : vector<8x64xf32>, vector<64x256xf32>, vector<8x256xf32> -> vector<8x256xf32>
    %cst_25 = arith.constant dense<0.000000e+00> : vector<16x256xf32>
    %29 = tpu.matmul %1, %28, %cst_25 {dimension_numbers = #tpu.dot_dimension_numbers<[1], [0], [0], [1], [0, 0, 1, 1], [], []>} : vector<16x8xf32>, vector<8x256xf32>, vector<16x256xf32> -> vector<16x256xf32>
    %c0_26 = arith.constant 0 : index
    %c0_27 = arith.constant 0 : index
    %c0_28 = arith.constant 0 : index
    %c0_29 = arith.constant 0 : index
    %30 = vector.load %arg6[%c0_26, %c0_27, %c0_28, %c0_29] : memref<1x2x16x256xf32, #tpu.memory_space<vmem>>, vector<1x1x16x256xf32>
    %31 = vector.shape_cast %30 : vector<1x1x16x256xf32> to vector<16x256xf32>
    %32 = vector.shape_cast %29 : vector<16x256xf32> to vector<1x1x16x256xf32>
    tpu.vector_store %arg6[%c0_26, %c0_27, %c0_28, %c0_29], %32 {strides = array<i32>} : memref<1x2x16x256xf32, #tpu.memory_space<vmem>>, vector<1x1x16x256xf32>,
    %c0_30 = arith.constant 0 : index
    %c0_31 = arith.constant 0 : index
    %c0_32 = arith.constant 0 : index
    %c0_33 = arith.constant 0 : index
    %33 = vector.load %arg3[%c0_30, %c0_31, %c0_32, %c0_33] : memref<1x4x8x64xf32, #tpu.memory_space<vmem>>, vector<1x1x8x64xf32>
    %34 = vector.shape_cast %33 : vector<1x1x8x64xf32> to vector<8x64xf32>
    %c1_34 = arith.constant 1 : index
    %c0_35 = arith.constant 0 : index
    %35 = memref.load %arg1[%c1_34, %c0_35] : memref<2x4xf32, #tpu.memory_space<smem>>
    %36 = vector.broadcast %35 : f32 to vector<8x64xf32>
    %37 = arith.mulf %34, %36 : vector<8x64xf32>
    %c0_36 = arith.constant 0 : index
    %c1_37 = arith.constant 1 : index
    %c0_38 = arith.constant 0 : index
    %c0_39 = arith.constant 0 : index
    %38 = vector.load %arg3[%c0_36, %c1_37, %c0_38, %c0_39] : memref<1x4x8x64xf32, #tpu.memory_space<vmem>>, vector<1x1x8x64xf32>
    %39 = vector.shape_cast %38 : vector<1x1x8x64xf32> to vector<8x64xf32>
    %c1_40 = arith.constant 1 : index
    %c1_41 = arith.constant 1 : index
    %40 = memref.load %arg1[%c1_40, %c1_41] : memref<2x4xf32, #tpu.memory_space<smem>>
    %41 = vector.broadcast %40 : f32 to vector<8x64xf32>
    %42 = arith.mulf %39, %41 : vector<8x64xf32>
    %43 = arith.addf %37, %42 : vector<8x64xf32>
    %c0_42 = arith.constant 0 : index
    %c2_43 = arith.constant 2 : index
    %c0_44 = arith.constant 0 : index
    %c0_45 = arith.constant 0 : index
    %44 = vector.load %arg3[%c0_42, %c2_43, %c0_44, %c0_45] : memref<1x4x8x64xf32, #tpu.memory_space<vmem>>, vector<1x1x8x64xf32>
    %45 = vector.shape_cast %44 : vector<1x1x8x64xf32> to vector<8x64xf32>
    %c1_46 = arith.constant 1 : index
    %c2_47 = arith.constant 2 : index
    %46 = memref.load %arg1[%c1_46, %c2_47] : memref<2x4xf32, #tpu.memory_space<smem>>
    %47 = vector.broadcast %46 : f32 to vector<8x64xf32>
    %48 = arith.mulf %45, %47 : vector<8x64xf32>
    %49 = arith.addf %43, %48 : vector<8x64xf32>
    %c0_48 = arith.constant 0 : index
    %c3_49 = arith.constant 3 : index
    %c0_50 = arith.constant 0 : index
    %c0_51 = arith.constant 0 : index
    %50 = vector.load %arg3[%c0_48, %c3_49, %c0_50, %c0_51] : memref<1x4x8x64xf32, #tpu.memory_space<vmem>>, vector<1x1x8x64xf32>
    %51 = vector.shape_cast %50 : vector<1x1x8x64xf32> to vector<8x64xf32>
    %c1_52 = arith.constant 1 : index
    %c3_53 = arith.constant 3 : index
    %52 = memref.load %arg1[%c1_52, %c3_53] : memref<2x4xf32, #tpu.memory_space<smem>>
    %53 = vector.broadcast %52 : f32 to vector<8x64xf32>
    %54 = arith.mulf %51, %53 : vector<8x64xf32>
    %55 = arith.addf %49, %54 : vector<8x64xf32>
    %c1_54 = arith.constant 1 : index
    %56 = memref.load %arg2[%c1_54] : memref<2xf32, #tpu.memory_space<smem>>
    %57 = vector.broadcast %56 : f32 to vector<8x64xf32>
    %58 = arith.addf %55, %57 : vector<8x64xf32>
    %cst_55 = arith.constant dense<0.000000e+00> : vector<8x256xf32>
    %59 = tpu.matmul %58, %0, %cst_55 {dimension_numbers = #tpu.dot_dimension_numbers<[1], [0], [0], [1], [0, 0, 1, 1], [], []>} : vector<8x64xf32>, vector<64x256xf32>, vector<8x256xf32> -> vector<8x256xf32>
    %cst_56 = arith.constant dense<0.000000e+00> : vector<16x256xf32>
    %60 = tpu.matmul %1, %59, %cst_56 {dimension_numbers = #tpu.dot_dimension_numbers<[1], [0], [0], [1], [0, 0, 1, 1], [], []>} : vector<16x8xf32>, vector<8x256xf32>, vector<16x256xf32> -> vector<16x256xf32>
    %c0_57 = arith.constant 0 : index
    %c1_58 = arith.constant 1 : index
    %c0_59 = arith.constant 0 : index
    %c0_60 = arith.constant 0 : index
    %61 = vector.load %arg6[%c0_57, %c1_58, %c0_59, %c0_60] : memref<1x2x16x256xf32, #tpu.memory_space<vmem>>, vector<1x1x16x256xf32>
    %62 = vector.shape_cast %61 : vector<1x1x16x256xf32> to vector<16x256xf32>
    %63 = vector.shape_cast %60 : vector<16x256xf32> to vector<1x1x16x256xf32>
    tpu.vector_store %arg6[%c0_57, %c1_58, %c0_59, %c0_60], %63 {strides = array<i32>} : memref<1x2x16x256xf32, #tpu.memory_space<vmem>>, vector<1x1x16x256xf32>,
    return
  }
  func.func @transform_0(%arg0: i32) -> (i32, i32) {
    %c0_i32 = arith.constant 0 : i32
    %c0_i32_0 = arith.constant 0 : i32
    %c0_i32_1 = arith.constant 0 : i32
    return %c0_i32, %c0_i32_0 : i32, i32
  }
  func.func @transform_1(%arg0: i32) -> i32 {
    %c0_i32 = arith.constant 0 : i32
    %c0_i32_0 = arith.constant 0 : i32
    return %c0_i32 : i32
  }
  func.func @transform_2(%arg0: i32) -> (i32, i32, i32, i32) {
    %c0_i32 = arith.constant 0 : i32
    %c0_i32_0 = arith.constant 0 : i32
    %c0_i32_1 = arith.constant 0 : i32
    %c0_i32_2 = arith.constant 0 : i32
    return %arg0, %c0_i32, %c0_i32_0, %c0_i32_1 : i32, i32, i32, i32
  }
  func.func @transform_3(%arg0: i32) -> (i32, i32) {
    %c0_i32 = arith.constant 0 : i32
    %c0_i32_0 = arith.constant 0 : i32
    %c0_i32_1 = arith.constant 0 : i32
    return %c0_i32, %c0_i32_0 : i32, i32
  }
  func.func @transform_4(%arg0: i32) -> (i32, i32) {
    %c0_i32 = arith.constant 0 : i32
    %c0_i32_0 = arith.constant 0 : i32
    %c0_i32_1 = arith.constant 0 : i32
    return %c0_i32, %c0_i32_0 : i32, i32
  }
  func.func @transform_5(%arg0: i32) -> (i32, i32, i32, i32) {
    %c0_i32 = arith.constant 0 : i32
    %c0_i32_0 = arith.constant 0 : i32
    %c0_i32_1 = arith.constant 0 : i32
    %c0_i32_2 = arith.constant 0 : i32
    return %arg0, %c0_i32, %c0_i32_0, %c0_i32_1 : i32, i32, i32, i32
  }
}

</mosaic_0001>

<bundles_post_ra>
// kernel: tpu_custom_call.1
= control target key start
LH: loop header
LB: loop body
LE: loop exit
PB: predicated region body
PF: predicated region fallthrough
CT: control target
= control target key end

     0   :  { %10 = vsyncpa [#allocation5], 0  ;;  %s1246_s0 = inlined_call_operand.vmem [shape: f32[2,4], index: 0, kind: input, shape index: {}]   ;;  %s1247_s1 = inlined_call_operand.vmem [shape: f32[2], index: 1, kind: input, shape index: {}]   ;;  %s1248_s2 = inlined_call_operand.hbm [shape: f32[2,4,8,64], index: 2, kind: input, shape index: {}]   ;;  %s1249_s3 = inlined_call_operand.hbm [shape: f32[64,256], index: 3, kind: input, shape index: {}]   ;;  %s1250_s4 = inlined_call_operand.vmem [shape: f32[16,8], index: 4, kind: input, shape index: {}]   ;;  %s1251_s5 = inlined_call_operand.hbm [shape: f32[2,2,16,256], index: 5, kind: output, shape index: {}]  }
   0x1   :  { %11 = vsyncpa [#allocation7], 0 }
   0x2   :  { %12 = vsyncpa [#allocation3], 0 }
   0x3   :  { %14 = vsyncpa [#allocation3 + $0x1], 0 }
   0x4   :  { %15 = vsyncpa [#allocation10], 0 }
   0x5   :  { %16 = vsyncpa [#allocation4], 0 }
   0x6   :  { %18 = vsyncpa [#allocation4 + $0x1], 0  ;;  %s1016_s18 = smov 0   ;;  %s1018_s19 = smov 0  }
   0x7   :  { %s1020_s20 = smov 0   ;;  %s1022_s21 = smov 0  }
   0x8 LB: > { %s1037_s22 = sadd.s32 4294967295, %s975_s21   ;;  %s670_s23 = sadd.s32 4294967294, %s975_s21   ;;  %s975_s21 = sphi %s1022_s21, %s1261_s21   ;;  %s971_s20 = sphi %s1020_s20, %s1260_s20   ;;  %s967_s19 = sphi %s1018_s19, %s1259_s19   ;;  %s963_s18 = sphi %s1016_s18, %s1258_s18  }
   0x9   : > { %p86_p0 = scmp.ne.s32.totalorder %s967_s19, %s963_s18  ;;  %p87_p1 = scmp.eq.s32.totalorder %s1037_s22, 0 }
   0xa   : > { %p152_p2 = scmp.eq.s32.totalorder %s1037_s22, 1  ;;  %p158_p3 = scmp.eq.s32.totalorder %s670_s23, 1 }
   0xb   : > { %p1046_p4 = por %p87_p1, %p86_p0  ;;  %p671_p5 = scmp.ge.s32.totalorder %s975_s21, 1 }
   0xc   : > { %p1051_p6 = por %p158_p3, %p86_p0  ;;  %p165_p7 = scmp.lt.s32.totalorder %s975_s21, 3 }
   0xd   : > { %s177_s28 = sshll.u32 %s1246_s0, 4  ;;  %s187_s7 = sshll.u32 %s1247_s1, 4  ;;  %s178_s28 = int_to_ptr.vmem [resolvable:$true] %s177_s28  ;;  %s188_s7 = int_to_ptr.vmem [resolvable:$true] %s187_s7 }
   0xe   : > { %p1059_p8 = pnand %p671_p5, %p165_p7  ;;  %s196_s10 = sshll.u32 %s1249_s3, 4  ;;  %s197_s10 = int_to_ptr.hbm [resolvable:$true] %s196_s10 }
   0xf   : > { %s977_s11 = smov [#allocation9]   ;;  %s978_s13 = smov [#allocation2]  }
  0x10   : > { %p740_p10 = pneg %p1059_p8  ;;  %s198_s12 = sshll.u32 %s977_s11, 4  ;;  %s199_s12 = int_to_ptr.vmem [resolvable:$true] %s198_s12 }
  0x11   : > { %s979_s14 = smov [#allocation6]   ;;  %s980_s15 = smov 256  }
  0x12   : > { %p741_p11 = pnand %p740_p10, %p87_p1  ;;  %s981_s16 = smov 16  }
  0x13   : > { %s1075_s17 = sadd.s32 1, %s975_s21   ;;  %s73_s26 = sadd.s32 1, %s971_s20 }
  0x14   : > { %743 = dma.vmem_to_smem (!%p741_p11), %s178_s28, 32, %s978_s13, [#allocation5]  }
  0x15   : > { %746 = dma.vmem_to_smem (!%p741_p11), %s188_s7, 16, %s979_s14, [#allocation7]  }
  0x16   : > { %749 = dma.hbm_to_vmem [thread:$0]  (!%p741_p11), %s197_s10, 2048, %s199_s12, [#allocation10], %s980_s15, %s980_s15, %s981_s16  }
  0x17   : > { %s70_s23 = ssub.s32 %s975_s21, %s1075_s17  ;;  %p80_p13 = scmp.ne.s32.totalorder %s971_s20, %s967_s19 }
  0x18   : > { %p71_p12 = scmp.eq.s32.totalorder %s70_s23, 0  ;;  %p81_p0 = scmp.eq.s32.totalorder %s975_s21, 0 }
  0x19   : > { %p761_p3 = scmp.lt.s32.totalorder %s975_s21, 2  ;;  %p1089_p7 = por %p152_p2, %p80_p13 }
  0x1a   : > { %s1085_s27 = scalar_select %p71_p12, %s971_s20, %s73_s26  }
  0x1b   : > { %p82_p5 = por %p81_p0, %p80_p13  ;;  %s215_s30 = sand.u32 1, %s971_s20  }
  0x1c   : > { %s720_s6 = sshll.u32 %s975_s21, 5  ;;  %s676_s7 = sshll.u32 %s215_s30, 5 }
  0x1d   : > { %s224_s10 = scalar_lea.hbm %s1248_s2, %s720_s6  ;;  %s219_s12 = scalar_lea.vmem [#allocation8], %s676_s7 }
  0x1e   : > { %s225_s11 = sshll.u32 %s224_s10, 4  ;;  %s227_s13 = sshll.u32 %s219_s12, 4  ;;  %s226_s11 = int_to_ptr.hbm [resolvable:$true] %s225_s11  ;;  %s228_s13 = int_to_ptr.vmem [resolvable:$true] %s227_s13 }
  0x1f   : > { %p1100_p10 = pnand %p761_p3, %p82_p5  ;;  %s216_s15 = scalar_lea.sflag [#allocation3], %s215_s30 }
  0x20   : > { %s867_s16 = sshra.s32 %s226_s11, 4  ;;  %s874_s7 = scalar_lea.hbm %s1248_s2, 64  ;;  %s868_s16 = int_to_ptr.hbm [resolvable:$true] %s867_s16 }
  0x21   : > { %s869_s23 = scalar_lea.hbm %s868_s16, 32  ;;  %p871_p11 = pneg %p1100_p10 }
  0x22   : > { %p870_p2 = scmp.ne.s32.totalorder %s868_s16, %s869_s23  ;;  %p875_p0 = scmp.lt.s32.totalorder %s868_s16, %s1248_s2 }
  0x23   : > { %p876_p3 = scmp.lt.s32.totalorder %s874_s7, %s869_s23 }
  0x24   : > { %p872_p12 = pnand %p871_p11, %p870_p2 }
  0x25   : > { %p877_p5 = por %p876_p3, %p875_p0 }
  0x26   : > { %p873_p13 = pneg %p872_p12 }
  0x28   : > { %p878_p9 = pnand %p877_p5, %p873_p13 }
  0x2a   : > { %881 = shalt.err (!%p878_p9)
}
  0x2b   : > { %s982_s30 = smov 128   ;;  %s983_s10 = smov 8  }
  0x2c   : > { %753 = dma.hbm_to_vmem [thread:$0]  (!%p1100_p10), %s226_s11, 512, %s228_s13, %s216_s15, %s982_s30, %s982_s30, %s983_s10  }
  0x2d   : > { %239 = sbr.rel (%p1059_p8) target bundleno = 493 (0x1ed), region = 40 }
  0x32   : > { %942 = dma.done.wait (%p87_p1), [#allocation5], 32  }
  0x33   : > { %944 = vsyncadd (%p87_p1), [#allocation5], 4294967264 }
  0x34   : > { %946 = dma.done.wait (%p87_p1), [#allocation7], 16  }
  0x35   : > { %948 = vsyncadd (%p87_p1), [#allocation7], 4294967280  ;;  %s1125_s12 = sand.u32 1, %s967_s19  }
  0x36   : > { %s682_s29 = sshll.u32 %s1125_s12, 5  ;;  %s252_s11 = scalar_lea.sflag [#allocation3], %s1125_s12 }
  0x37   : > { %s1129_s13 = scalar_lea.vmem [#allocation8], %s682_s29 }
  0x38   : > { %950 = dma.done.wait (%p1046_p4), %s252_s11, 512  }
  0x39   : > { %952 = vsyncadd (%p1046_p4), %s252_s11, 4294966784 }
  0x3a   : > { %954 = dma.done.wait (%p87_p1), [#allocation10], 2048  }
  0x3b   : > { %956 = vsyncadd (%p87_p1), [#allocation10], 4294965248 }
  0x3c   : > { %266 = sfence }
  0x3d   : > { %v1139_v0 = vld [vmem:[#allocation9 + $0x70] sm:$0xff]  ;;  %v1141_v1 = vld [vmem:[#allocation9 + $0x78] sm:$0xff]  ;;  %v1143_v2 = vld [vmem:[#allocation9 + $0x60] sm:$0xff]  ;;  %s308_s14 = sld [smem:[#allocation2]]  ;;  %vm332_vm0 = vcmask 523264   ;;  %vm376_vm1 = vcmask 64512  }
  0x3e   : > { %344 = vmatpush.msra.mxu0 %v1139_v0  ;;  %364 = vmatpush.msra.mxu1 %v1141_v1  ;;  %v1147_v3 = vld [vmem:[#allocation9 + $0x68] sm:$0xff]  ;;  %s686_s24 = sld [smem:[#allocation2 + $0x1]]  ;;  %v1149_v4 = vld [vmem:[#allocation9 + $0x50] sm:$0xff]  ;;  %v1151_v5 = vld [vmem:[#allocation9 + $0x58] sm:$0xff] }
  0x3f   : > { %s688_s15 = sld [smem:[#allocation2 + $0x2]]  ;;  %v1155_v6 = vld [vmem:[#allocation9 + $0x40] sm:$0xff]  ;;  %v1157_v7 = vld [vmem:[#allocation9 + $0x48] sm:$0xff]  ;;  %v1165_v10 = vld [vmem:[#allocation9 + $0x30] sm:$0xff] }
  0x40   : > { %345 = vmatpush.msra.mxu0 %v1143_v2  ;;  %365 = vmatpush.msra.mxu1 %v1147_v3  ;;  %s690_s16 = sld [smem:[#allocation2 + $0x3]]  ;;  %v307_v8 = vld [vmem:[%s1129_s13] sm:$0xff]  ;;  %v685_v9 = vld [vmem:[%s1129_s13 + $0x8] sm:$0xff]  ;;  %v1167_v11 = vld [vmem:[#allocation9 + $0x38] sm:$0xff] }
  0x41   : > { %s1163_s23 = sld [smem:[#allocation6]]  ;;  %v687_v13 = vld [vmem:[%s1129_s13 + $0x10] sm:$0xff]  ;;  %v689_v16 = vld [vmem:[%s1129_s13 + $0x18] sm:$0xff]  ;;  %v1173_v17 = vld [vmem:[#allocation9 + $0x20] sm:$0xff]  ;;  %s684_s13 = sshll.u32 %s1125_s12, 6 }
  0x42   : > { %346 = vmatpush.msra.mxu0 %v1149_v4  ;;  %366 = vmatpush.msra.mxu1 %v1151_v5  ;;  %v1175_v18 = vld [vmem:[#allocation9 + $0x28] sm:$0xff]  ;;  %v291_v23 = vld [vmem:[#allocation9 + $0x10] sm:$0xff]  ;;  %v292_v24 = vld [vmem:[#allocation9 + $0x18] sm:$0xff]  ;;  %s697_s26 = sld [smem:[#allocation2 + $0x80]] }
  0x43   : > { %v309_v12 = vstv %s308_s14  ;;  %v289_v27 = vld [vmem:[#allocation9] sm:$0xff]  ;;  %v290_v28 = vld [vmem:[#allocation9 + $0x8] sm:$0xff]  ;;  %s699_s6 = sld [smem:[#allocation2 + $0x81]]  ;;  %s288_s14 = scalar_lea.vmem [#allocation11], %s684_s13 }
  0x44   : > { %347 = vmatpush.msra.mxu0 %v1155_v6  ;;  %367 = vmatpush.msra.mxu1 %v1157_v7  ;;  %v310_v14 = vmul.f32 %v309_v12, %v307_v8  ;;  %v314_v15 = vstv %s686_s24  ;;  %s701_s7 = sld [smem:[#allocation2 + $0x82]]  ;;  %v305_v37 = vld [vmem:[%s1250_s4] sm:$0xff]  ;;  %v306_v46 = vld [vmem:[%s1250_s4 + $0x8] sm:$0xff]  ;;  %s721_s24 = sshll.u32 %s1037_s22, 6 }
  0x45   : > { %v315_v19 = vmul.f32 %v685_v9, %v314_v15  ;;  %v320_v20 = vstv %s688_s15  ;;  %s703_s8 = sld [smem:[#allocation2 + $0x83]] }
  0x46   : > { %348 = vmatpush.msra.mxu0 %v1165_v10  ;;  %368 = vmatpush.msra.mxu1 %v1167_v11  ;;  %v321_v21 = vmul.f32 %v687_v13, %v320_v20  ;;  %v326_v22 = vstv %s690_s16  ;;  %s704_s10 = sld [smem:[#allocation6 + $0x1]] }
  0x47   : > { %v316_v25 = vadd.f32 %v315_v19, %v310_v14  ;;  %v327_v26 = vmul.f32 %v689_v16, %v326_v22  ;;  %v330_v30 = vstv %s1163_s23  ;;  %s561_s23 = scalar_lea.hbm %s1251_s5, %s721_s24 }
  0x48   : > { %349 = vmatpush.msra.mxu0 %v1173_v17  ;;  %369 = vmatpush.msra.mxu1 %v1175_v18  ;;  %v435_v33 = vstv %s697_s26  ;;  %s562_s26 = sshll.u32 %s288_s14, 4  ;;  %s563_s26 = int_to_ptr.vmem [resolvable:$true] %s562_s26 }
  0x49   : > { %v322_v29 = vadd.f32 %v321_v21, %v316_v25  ;;  %v439_v34 = vstv %s699_s6  ;;  %v436_v35 = vmul.f32 %v435_v33, %v307_v8  ;;  %s564_s6 = sshll.u32 %s561_s23, 4  ;;  %s565_s6 = int_to_ptr.hbm [resolvable:$true] %s564_s6 }
  0x4a   : > { %350 = vmatpush.msra.mxu0 %v291_v23  ;;  %370 = vmatpush.msra.mxu1 %v292_v24  ;;  %v440_v36 = vmul.f32 %v685_v9, %v439_v34  ;;  %v444_v38 = vstv %s701_s7  ;;  %s550_s7 = scalar_lea.sflag [#allocation4], %s1125_s12 }
  0x4b   : > { %v328_v31 = vadd.f32 %v327_v26, %v322_v29  ;;  %v445_v42 = vmul.f32 %v687_v13, %v444_v38  ;;  %v449_v43 = vstv %s703_s8  ;;  %s911_s8 = sshra.s32 %s565_s6, 4  ;;  %s912_s8 = int_to_ptr.hbm [resolvable:$true] %s911_s8 }
  0x4c   : > { %351 = vmatpush.msra.mxu0 %v289_v27  ;;  %371 = vmatpush.msra.mxu1 %v290_v28  ;;  %v441_v41 = vadd.f32 %v440_v36, %v436_v35  ;;  %v450_v45 = vmul.f32 %v689_v16, %v449_v43  ;;  %v453_v48 = vstv %s704_s10  ;;  %s913_s22 = scalar_lea.hbm %s912_s8, 64  ;;  %s917_s10 = scalar_lea.hbm %s1251_s5, 128 }
  0x4d   : > { %v331_v32 = vadd.f32 %v330_v30, %v328_v31  ;;  %p914_p1 = scmp.ne.s32.totalorder %s912_s8, %s913_s22  ;;  %p918_p9 = scmp.lt.s32.totalorder %s912_s8, %s1251_s5 }
  0x4e   : > { %v446_v44 = vadd.f32 %v445_v42, %v441_v41  ;;  %p919_p10 = scmp.lt.s32.totalorder %s917_s10, %s913_s22 }
  0x4f   : > { %691 = vmatmul.msk.f32.vlgmr.msra.gmra.mxu0 %vm332_vm0, %v331_v32  ;;  %692 = vmatmul.msk.f32.vlgmr.msra.gmra.mxu1 %vm332_vm0, %v331_v32  ;;  %p915_p4 = pnand %p914_p1, %p1089_p7 }
  0x50   : > { %v451_v47 = vadd.f32 %v450_v45, %v446_v44  ;;  %p920_p2 = por %p919_p10, %p918_p9 }
  0x51   : > { %p916_p8 = pneg %p915_p4 }
  0x52   : > { %v454_v49 = vadd.f32 %v453_v48, %v451_v47 }
  0x53   : > { %p921_p11 = pnand %p920_p2, %p916_p8 }
  0xcc   : > { %v353_v39 = vpop.f32.mrf.mxu0  ;;  %v373_v40 = vpop.f32.mrf.mxu1 }
  0xcd   : > { %398 = vmatpush.msra.mxu2 %v353_v39  ;;  %421 = vmatpush.msra.mxu3 %v373_v40 }
  0xce   : > { %693 = vmatmul.msk.f32.vlgmr.msra.gmra.mxu2 %vm376_vm1, %v305_v37  ;;  %695 = vmatmul.msk.f32.vlgmr.msra.gmra.mxu3 %vm376_vm1, %v305_v37 }
  0xcf   : > { %466 = vmatpush.msrb.mxu2 %v1139_v0  ;;  %486 = vmatpush.msrb.mxu3 %v1141_v1 }
  0xd1   : > { %467 = vmatpush.msrb.mxu2 %v1143_v2  ;;  %487 = vmatpush.msrb.mxu3 %v1147_v3 }
  0xd3   : > { %468 = vmatpush.msrb.mxu2 %v1149_v4  ;;  %488 = vmatpush.msrb.mxu3 %v1151_v5 }
  0xd5   : > { %469 = vmatpush.msrb.mxu2 %v1155_v6  ;;  %489 = vmatpush.msrb.mxu3 %v1157_v7 }
  0xd6   : > { %694 = vmatmul.msk.f32.gmra.mxu2 %vm376_vm1, %v306_v46  ;;  %696 = vmatmul.msk.f32.gmra.mxu3 %vm376_vm1, %v306_v46 }
  0xd7   : > { %470 = vmatpush.msrb.mxu2 %v1165_v10  ;;  %490 = vmatpush.msrb.mxu3 %v1167_v11 }
  0xd9   : > { %471 = vmatpush.msrb.mxu2 %v1173_v17  ;;  %491 = vmatpush.msrb.mxu3 %v1175_v18 }
  0xdb   : > { %472 = vmatpush.msrb.mxu2 %v291_v23  ;;  %492 = vmatpush.msrb.mxu3 %v292_v24 }
  0xdd   : > { %473 = vmatpush.msrb.mxu2 %v289_v27  ;;  %493 = vmatpush.msrb.mxu3 %v290_v28 }
  0xde   : > { %705 = vmatmul.msk.f32.vlgmr.msrb.gmra.mxu2 %vm332_vm0, %v454_v49  ;;  %706 = vmatmul.msk.f32.vlgmr.msrb.gmra.mxu3 %vm332_vm0, %v454_v49 }
 0x151   : > { %v400_v50 = vpop.f32.mrf.mxu2  ;;  %v423_v51 = vpop.f32.mrf.mxu3 }
 0x152   : > { %429 = vst [vmem:[%s288_s14] sm:$0xff] %v400_v50 }
 0x153   : > { %430 = vst [vmem:[%s288_s14 + $0x8] sm:$0xff] %v423_v51 }
 0x159   : > { %v403_v52 = vpop.f32.mrf.mxu2  ;;  %v426_v53 = vpop.f32.mrf.mxu3 }
 0x15a   : > { %431 = vst [vmem:[%s288_s14 + $0x10] sm:$0xff] %v403_v52 }
 0x15b   : > { %432 = vst [vmem:[%s288_s14 + $0x18] sm:$0xff] %v426_v53 }
 0x161   : > { %v475_v54 = vpop.f32.mrf.mxu2  ;;  %v495_v55 = vpop.f32.mrf.mxu3 }
 0x162   : > { %513 = vmatpush.msrb.mxu0 %v475_v54  ;;  %722 = vmatpush.msra.mxu2 %v475_v54 }
 0x163   : > { %536 = vmatpush.msrb.mxu1 %v495_v55  ;;  %723 = vmatpush.msra.mxu3 %v495_v55 }
 0x164   : > { %708 = vmatmul.msk.f32.vlgmr.msra.gmra.mxu2 %vm376_vm1, %v306_v46  ;;  %710 = vmatmul.msk.f32.vlgmr.msra.gmra.mxu3 %vm376_vm1, %v306_v46 }
 0x165   : > { %707 = vmatmul.msk.f32.vlgmr.msrb.gmra.mxu0 %vm376_vm1, %v305_v37  ;;  %709 = vmatmul.msk.f32.vlgmr.msrb.gmra.mxu1 %vm376_vm1, %v305_v37 }
 0x1e2   : > { %v515_v56 = vpop.f32.mrf.mxu0  ;;  %v538_v57 = vpop.f32.mrf.mxu1 }
 0x1e3   : > { %711 = vst [vmem:[%s288_s14 + $0x20] sm:$0xff] %v515_v56 }
 0x1e4   : > { %712 = vst [vmem:[%s288_s14 + $0x28] sm:$0xff] %v538_v57 }
 0x1e7   : > { %v518_v58 = vpop.f32.mrf.mxu2  ;;  %v541_v59 = vpop.f32.mrf.mxu3 }
 0x1e8   : > { %713 = vst [vmem:[%s288_s14 + $0x30] sm:$0xff] %v518_v58 }
 0x1e9   : > { %714 = vst [vmem:[%s288_s14 + $0x38] sm:$0xff] %v541_v59 }
 0x1ea   : > { %924 = shalt.err (!%p921_p11)
}
 0x1eb   : > { %s984_s12 = smov 256   ;;  %s985_s13 = smov 16  }
 0x1ec   : > { %738 = dma.vmem_to_hbm [thread:$0]  (%p1089_p7), %s563_s26, 1024, %s565_s6, %s550_s7, %s984_s12, %s984_s12, %s985_s13  }
 0x1ed PF: > { %s579_s14 = sand.u32 1, %s963_s18   ;;  %p1257_p12 = scmp.ge.s32.totalorder %s975_s21, 2 }
 0x1ee   : > { %s580_s24 = scalar_lea.sflag [#allocation4], %s579_s14 }
 0x1ef   : > { %p755_p13 = pnand %p1257_p12, %p1051_p6 }
 0x1f1   : > { %p756_p0 = pneg %p755_p13 }
 0x1f3   : > { %958 = dma.done.wait (%p756_p0), %s580_s24, 1024  }
 0x1f4   : > { %960 = vsyncadd (%p756_p0), %s580_s24, 4294966272  ;;  %p21_p3 = scmp.ge.s32.totalorder %s1075_s17, 4   ;;  %s1258_s18 = smov %s967_s19 }
 0x1f5   : > { %s1259_s19 = smov %s971_s20  ;;  %s1260_s20 = smov %s1085_s27 }
 0x1f6   : > { %s1261_s21 = smov %s1075_s17  ;;  %23 = sbr.rel (!%p21_p3) target bundleno = 8 (0x8), region = 102 }
 0x1fb   :  { %586 = vsyncpa [#allocation3], 1 }
 0x1fc   :  { %588 = vsyncpa [#allocation3 + $0x1], 1 }
 0x1fd   :  { %589 = vsyncpa [#allocation10], 1 }
 0x1fe   :  { %590 = vsyncpa [#allocation4], 1 }
 0x1ff   :  { %592 = vsyncpa [#allocation4 + $0x1], 1 }
 0x200   :  { %593 = vsyncpa [#allocation5], 1 }
 0x201   :  { %595 = vsyncpa [#allocation5 + $0x1], 1 }
 0x202   :  { %596 = vsyncpa [#allocation7], 1 }

</bundles_post_ra>
